<compile_context>
chip_gen: v5e
topology: v5e:2x2
jax: 0.10.0
libtpu: 0.0.40
codegen_flags: <defaults>
</compile_context>

<pallas_src>
import jax
import jax.numpy as jnp
from jax.experimental import pallas as pl
from jax.experimental.pallas import tpu as pltpu

HIDDEN = 256
W3_PAD = 128  # fc3 weight padded to 128 lanes for a clean MXU pass; only col 0 is real


def _round_up(n, m):
    return (n + m - 1) // m * m


def _choose_tile(b_pad, cap=1024):
    """Largest batch tile (multiple of 8) dividing b_pad, capped; prefer >=2
    grid steps for large batches so v7x's 2 TensorCores can split the work."""
    divs = [d for d in range(8, min(b_pad, cap) + 1, 8) if b_pad % d == 0]
    tile = divs[-1]
    if b_pad >= 512 and tile == b_pad:
        smaller = [d for d in divs if d <= b_pad // 2]
        if smaller:
            tile = smaller[-1]
    return tile


def _qnet_kernel(x_ref, a_ref, w1x_ref, w1a_ref, b1_ref,
                 w2_ref, b2_ref, w3_ref, b3_ref, o_ref):
    # bf16 cast fused into the kernel (cheap VPU pack, hides under MXU slack).
    x_bf = x_ref[...].astype(jnp.bfloat16)
    a_bf = a_ref[...].astype(jnp.bfloat16)

    # fc1 with fused concat: x @ W1[:obs] + a @ W1[obs:]  (bf16 MXU, f32 acc)
    h1 = (jnp.dot(x_bf, w1x_ref[...], preferred_element_type=jnp.float32)
          + jnp.dot(a_bf, w1a_ref[...], preferred_element_type=jnp.float32)
          + b1_ref[...])
    h1 = jnp.maximum(h1, 0.0)

    # fc2 + ReLU
    h2 = jnp.dot(h1.astype(jnp.bfloat16), w2_ref[...],
                 preferred_element_type=jnp.float32) + b2_ref[...]
    h2 = jnp.maximum(h2, 0.0)

    # fc3: padded (H, 128) weight for one clean MXU pass; keep only column 0.
    q = jnp.dot(h2.astype(jnp.bfloat16), w3_ref[...],
                preferred_element_type=jnp.float32)
    o_ref[...] = (q[:, :1] + b3_ref[...]).astype(o_ref.dtype)


def soft_q_forward(x, a, prepared_params, *, tile_cap=1024):
    """x: [B, obs_dim] f32, a: [B, act_dim] f32 -> q: [B, 1] f32."""
    w1x, w1a, b1, w2, b2, w3p, b3 = prepared_params
    B, obs_dim = x.shape
    act_dim = a.shape[1]
    H = w2.shape[0]

    # Minimal batch padding (multiple of 8 sublanes), then divisor-based tile.
    b_pad = _round_up(B, 8)
    if b_pad != B:
        x = jnp.pad(x, ((0, b_pad - B), (0, 0)))
        a = jnp.pad(a, ((0, b_pad - B), (0, 0)))
    tile_b = _choose_tile(b_pad, cap=tile_cap)
    grid = (b_pad // tile_b,)

    def batch_spec(d):
        return pl.BlockSpec((tile_b, d), lambda i: (i, 0))

    def const_spec(shape):
        return pl.BlockSpec(shape, lambda i: (0, 0))

    d_in = obs_dim + act_dim
    flops = 2 * b_pad * (d_in * H + H * H + H)
    bytes_accessed = (
        b_pad * d_in * 4                                   # x, a (f32)
        + (w1x.size + w1a.size + w2.size + w3p.size) * 2   # bf16 weights
        + (b1.size + b2.size + b3.size) * 4                # f32 biases
        + b_pad * 4)                                       # q output (f32)

    out = pl.pallas_call(
        _qnet_kernel,
        out_shape=jax.ShapeDtypeStruct((b_pad, 1), jnp.float32),
        grid=grid,
        in_specs=[
            batch_spec(obs_dim),          # x tile (f32)
            batch_spec(act_dim),          # a tile (f32)
            const_spec((obs_dim, H)),     # W1[:obs_dim]  (resident)
            const_spec((act_dim, H)),     # W1[obs_dim:]  (resident)
            const_spec((1, H)),           # b1
            const_spec((H, H)),           # W2
            const_spec((1, H)),           # b2
            const_spec((H, W3_PAD)),      # W3 (padded, resident)
            const_spec((1, 1)),           # b3
        ],
        out_specs=pl.BlockSpec((tile_b, 1), lambda i: (i, 0)),
        compiler_params=pltpu.CompilerParams(
            dimension_semantics=("parallel",)),
        cost_estimate=pl.CostEstimate(
            flops=flops, transcendentals=0, bytes_accessed=bytes_accessed),
    )(x, a, w1x, w1a, b1, w2, b2, w3p, b3)

    return out[:B]


def init_params(key, obs_dim, act_dim, hidden=HIDDEN):
    """nn.Linear-style init U(-1/sqrt(fan_in), 1/sqrt(fan_in))."""
    def linear(k, fan_in, fan_out):
        kw, kb = jax.random.split(k)
        bound = 1.0 / float(fan_in) ** 0.5
        w = jax.random.uniform(kw, (fan_in, fan_out), jnp.float32, -bound, bound)
        b = jax.random.uniform(kb, (1, fan_out), jnp.float32, -bound, bound)
        return w, b

    k1, k2, k3 = jax.random.split(key, 3)
    d_in = obs_dim + act_dim
    w1, b1 = linear(k1, d_in, hidden)
    w2, b2 = linear(k2, hidden, hidden)
    w3, b3 = linear(k3, hidden, 1)
    return (w1, b1, w2, b2, w3, b3)


def prepare_params(params, obs_dim):
    """One-time (per-weight-update) prep hoisted out of the forward path:
    split W1 for the fused concat, pad W3 to 128 lanes, cast weights to bf16."""
    w1, b1, w2, b2, w3, b3 = params
    w1x = w1[:obs_dim].astype(jnp.bfloat16)
    w1a = w1[obs_dim:].astype(jnp.bfloat16)
    w2b = w2.astype(jnp.bfloat16)
    w3p = jnp.pad(w3, ((0, 0), (0, W3_PAD - w3.shape[1]))).astype(jnp.bfloat16)
    b3s = b3.reshape(1, 1).astype(jnp.float32)
    return (w1x, w1a, b1.astype(jnp.float32), w2b, b2.astype(jnp.float32),
            w3p, b3s)


def reference_forward(x, a, prepared_params):
    """Pure-JAX reference matching the kernel's mixed precision."""
    w1x, w1a, b1, w2, b2, w3p, b3 = prepared_params
    h = (jnp.dot(x.astype(jnp.bfloat16), w1x, preferred_element_type=jnp.float32)
         + jnp.dot(a.astype(jnp.bfloat16), w1a, preferred_element_type=jnp.float32)
         + b1)
    h = jnp.maximum(h, 0.0)
    h = jnp.dot(h.astype(jnp.bfloat16), w2, preferred_element_type=jnp.float32) + b2
    h = jnp.maximum(h, 0.0)
    q = jnp.dot(h.astype(jnp.bfloat16), w3p, preferred_element_type=jnp.float32)
    return q[:, :1] + b3


if __name__ == "__main__":
    key = jax.random.PRNGKey(0)
    k_x, k_a, k_p = jax.random.split(key, 3)

    batch, obs_dim, act_dim = 8, 16, 8
    x = jax.random.normal(k_x, (batch, obs_dim), jnp.float32)
    a = jax.random.normal(k_a, (batch, act_dim), jnp.float32)
    params = init_params(k_p, obs_dim, act_dim, hidden=HIDDEN)
    prepped = prepare_params(params, obs_dim)

    q = soft_q_forward(x, a, prepped)
    q = jax.block_until_ready(q)

    q_ref = reference_forward(x, a, prepped)
    assert q.shape == (batch, 1), q.shape
    assert jnp.allclose(q, q_ref, atol=1e-3, rtol=1e-3), "mismatch vs reference"

    print("KERNEL_OK")
</pallas_src>

<mosaic_0001>
module attributes {stable_mosaic.version = 11 : i64} {
  func.func @_qnet_kernel(%arg0: i32, %arg1: memref<8x16xf32, #tpu.memory_space<vmem>>, %arg2: memref<8x8xf32, #tpu.memory_space<vmem>>, %arg3: memref<16x256xbf16, #tpu.memory_space<vmem>>, %arg4: memref<8x256xbf16, #tpu.memory_space<vmem>>, %arg5: memref<1x256xf32, #tpu.memory_space<vmem>>, %arg6: memref<256x256xbf16, #tpu.memory_space<vmem>>, %arg7: memref<1x256xf32, #tpu.memory_space<vmem>>, %arg8: memref<256x128xbf16, #tpu.memory_space<vmem>>, %arg9: memref<1x1xf32, #tpu.memory_space<vmem>>, %arg10: memref<8x1xf32, #tpu.memory_space<vmem>>) attributes {dimension_semantics = [#tpu.dimension_semantics<parallel>], iteration_bounds = array<i64: 1>, scalar_prefetch = 0 : i64, scratch_operands = 0 : i64, tpu.core_type = #tpu.core_type<tc>, window_params = [{transform_indices = @transform_0, window_bounds = array<i64: 8, 16>}, {transform_indices = @transform_1, window_bounds = array<i64: 8, 8>}, {pipeline_mode = #tpu.pipeline_mode<synchronous>, transform_indices = @transform_2, window_bounds = array<i64: 16, 256>}, {pipeline_mode = #tpu.pipeline_mode<synchronous>, transform_indices = @transform_3, window_bounds = array<i64: 8, 256>}, {pipeline_mode = #tpu.pipeline_mode<synchronous>, transform_indices = @transform_4, window_bounds = array<i64: 1, 256>}, {pipeline_mode = #tpu.pipeline_mode<synchronous>, transform_indices = @transform_5, window_bounds = array<i64: 256, 256>}, {pipeline_mode = #tpu.pipeline_mode<synchronous>, transform_indices = @transform_6, window_bounds = array<i64: 1, 256>}, {pipeline_mode = #tpu.pipeline_mode<synchronous>, transform_indices = @transform_7, window_bounds = array<i64: 256, 128>}, {pipeline_mode = #tpu.pipeline_mode<synchronous>, transform_indices = @transform_8, window_bounds = array<i64: 1, 1>}, {transform_indices = @transform_9, window_bounds = array<i64: 8, 1>}]} {
    %c0 = arith.constant 0 : index
    %c0_0 = arith.constant 0 : index
    %0 = vector.load %arg1[%c0, %c0_0] : memref<8x16xf32, #tpu.memory_space<vmem>>, vector<8x16xf32>
    %1 = arith.truncf %0 : vector<8x16xf32> to vector<8x16xbf16>
    %c0_1 = arith.constant 0 : index
    %c0_2 = arith.constant 0 : index
    %2 = vector.load %arg2[%c0_1, %c0_2] : memref<8x8xf32, #tpu.memory_space<vmem>>, vector<8x8xf32>
    %3 = arith.truncf %2 : vector<8x8xf32> to vector<8x8xbf16>
    %c0_3 = arith.constant 0 : index
    %c0_4 = arith.constant 0 : index
    %4 = vector.load %arg3[%c0_3, %c0_4] : memref<16x256xbf16, #tpu.memory_space<vmem>>, vector<16x256xbf16>
    %cst = arith.constant dense<0.000000e+00> : vector<8x256xf32>
    %5 = tpu.matmul %1, %4, %cst {dimension_numbers = #tpu.dot_dimension_numbers<[1], [0], [0], [1], [0, 0, 1, 1], [], []>} : vector<8x16xbf16>, vector<16x256xbf16>, vector<8x256xf32> -> vector<8x256xf32>
    %c0_5 = arith.constant 0 : index
    %c0_6 = arith.constant 0 : index
    %6 = vector.load %arg4[%c0_5, %c0_6] : memref<8x256xbf16, #tpu.memory_space<vmem>>, vector<8x256xbf16>
    %cst_7 = arith.constant dense<0.000000e+00> : vector<8x256xf32>
    %7 = tpu.matmul %3, %6, %cst_7 {dimension_numbers = #tpu.dot_dimension_numbers<[1], [0], [0], [1], [0, 0, 1, 1], [], []>} : vector<8x8xbf16>, vector<8x256xbf16>, vector<8x256xf32> -> vector<8x256xf32>
    %8 = arith.addf %5, %7 : vector<8x256xf32>
    %c0_8 = arith.constant 0 : index
    %c0_9 = arith.constant 0 : index
    %9 = vector.load %arg5[%c0_8, %c0_9] : memref<1x256xf32, #tpu.memory_space<vmem>>, vector<1x256xf32>
    %10 = vector.broadcast %9 : vector<1x256xf32> to vector<8x256xf32>
    %11 = arith.addf %8, %10 : vector<8x256xf32>
    %cst_10 = arith.constant 0.000000e+00 : f32
    %12 = vector.broadcast %cst_10 : f32 to vector<8x256xf32>
    %13 = arith.maximumf %11, %12 : vector<8x256xf32>
    %14 = arith.truncf %13 : vector<8x256xf32> to vector<8x256xbf16>
    %c0_11 = arith.constant 0 : index
    %c0_12 = arith.constant 0 : index
    %15 = vector.load %arg6[%c0_11, %c0_12] : memref<256x256xbf16, #tpu.memory_space<vmem>>, vector<256x256xbf16>
    %cst_13 = arith.constant dense<0.000000e+00> : vector<8x256xf32>
    %16 = tpu.matmul %14, %15, %cst_13 {dimension_numbers = #tpu.dot_dimension_numbers<[1], [0], [0], [1], [0, 0, 1, 1], [], []>} : vector<8x256xbf16>, vector<256x256xbf16>, vector<8x256xf32> -> vector<8x256xf32>
    %c0_14 = arith.constant 0 : index
    %c0_15 = arith.constant 0 : index
    %17 = vector.load %arg7[%c0_14, %c0_15] : memref<1x256xf32, #tpu.memory_space<vmem>>, vector<1x256xf32>
    %18 = vector.broadcast %17 : vector<1x256xf32> to vector<8x256xf32>
    %19 = arith.addf %16, %18 : vector<8x256xf32>
    %cst_16 = arith.constant 0.000000e+00 : f32
    %20 = vector.broadcast %cst_16 : f32 to vector<8x256xf32>
    %21 = arith.maximumf %19, %20 : vector<8x256xf32>
    %22 = arith.truncf %21 : vector<8x256xf32> to vector<8x256xbf16>
    %c0_17 = arith.constant 0 : index
    %c0_18 = arith.constant 0 : index
    %23 = vector.load %arg8[%c0_17, %c0_18] : memref<256x128xbf16, #tpu.memory_space<vmem>>, vector<256x128xbf16>
    %cst_19 = arith.constant dense<0.000000e+00> : vector<8x128xf32>
    %24 = tpu.matmul %22, %23, %cst_19 {dimension_numbers = #tpu.dot_dimension_numbers<[1], [0], [0], [1], [0, 0, 1, 1], [], []>} : vector<8x256xbf16>, vector<256x128xbf16>, vector<8x128xf32> -> vector<8x128xf32>
    %25 = vector.extract_strided_slice %24 {offsets = [0, 0], sizes = [8, 1], strides = [1, 1]} : vector<8x128xf32> to vector<8x1xf32>
    %c0_20 = arith.constant 0 : index
    %c0_21 = arith.constant 0 : index
    %26 = vector.load %arg9[%c0_20, %c0_21] : memref<1x1xf32, #tpu.memory_space<vmem>>, vector<1x1xf32>
    %27 = vector.broadcast %26 : vector<1x1xf32> to vector<8x1xf32>
    %28 = arith.addf %25, %27 : vector<8x1xf32>
    %c0_22 = arith.constant 0 : index
    %c0_23 = arith.constant 0 : index
    %29 = vector.load %arg10[%c0_22, %c0_23] : memref<8x1xf32, #tpu.memory_space<vmem>>, vector<8x1xf32>
    tpu.vector_store %arg10[%c0_22, %c0_23], %28 {strides = array<i32>} : memref<8x1xf32, #tpu.memory_space<vmem>>, vector<8x1xf32>,
    return
  }
  func.func @transform_0(%arg0: i32) -> (i32, i32) {
    %c0_i32 = arith.constant 0 : i32
    %c0_i32_0 = arith.constant 0 : i32
    return %arg0, %c0_i32 : i32, i32
  }
  func.func @transform_1(%arg0: i32) -> (i32, i32) {
    %c0_i32 = arith.constant 0 : i32
    %c0_i32_0 = arith.constant 0 : i32
    return %arg0, %c0_i32 : i32, i32
  }
  func.func @transform_2(%arg0: i32) -> (i32, i32) {
    %c0_i32 = arith.constant 0 : i32
    %c0_i32_0 = arith.constant 0 : i32
    %c0_i32_1 = arith.constant 0 : i32
    return %c0_i32, %c0_i32_0 : i32, i32
  }
  func.func @transform_3(%arg0: i32) -> (i32, i32) {
    %c0_i32 = arith.constant 0 : i32
    %c0_i32_0 = arith.constant 0 : i32
    %c0_i32_1 = arith.constant 0 : i32
    return %c0_i32, %c0_i32_0 : i32, i32
  }
  func.func @transform_4(%arg0: i32) -> (i32, i32) {
    %c0_i32 = arith.constant 0 : i32
    %c0_i32_0 = arith.constant 0 : i32
    %c0_i32_1 = arith.constant 0 : i32
    return %c0_i32, %c0_i32_0 : i32, i32
  }
  func.func @transform_5(%arg0: i32) -> (i32, i32) {
    %c0_i32 = arith.constant 0 : i32
    %c0_i32_0 = arith.constant 0 : i32
    %c0_i32_1 = arith.constant 0 : i32
    return %c0_i32, %c0_i32_0 : i32, i32
  }
  func.func @transform_6(%arg0: i32) -> (i32, i32) {
    %c0_i32 = arith.constant 0 : i32
    %c0_i32_0 = arith.constant 0 : i32
    %c0_i32_1 = arith.constant 0 : i32
    return %c0_i32, %c0_i32_0 : i32, i32
  }
  func.func @transform_7(%arg0: i32) -> (i32, i32) {
    %c0_i32 = arith.constant 0 : i32
    %c0_i32_0 = arith.constant 0 : i32
    %c0_i32_1 = arith.constant 0 : i32
    return %c0_i32, %c0_i32_0 : i32, i32
  }
  func.func @transform_8(%arg0: i32) -> (i32, i32) {
    %c0_i32 = arith.constant 0 : i32
    %c0_i32_0 = arith.constant 0 : i32
    %c0_i32_1 = arith.constant 0 : i32
    return %c0_i32, %c0_i32_0 : i32, i32
  }
  func.func @transform_9(%arg0: i32) -> (i32, i32) {
    %c0_i32 = arith.constant 0 : i32
    %c0_i32_0 = arith.constant 0 : i32
    return %arg0, %c0_i32 : i32, i32
  }
}

</mosaic_0001>

<bundles_post_ra>
// kernel: tpu_custom_call.1
= control target key start
LH: loop header
LB: loop body
LE: loop exit
PB: predicated region body
PF: predicated region fallthrough
CT: control target
= control target key end

     0   :  { %s1158_s0 = inlined_call_operand.hbm [shape: f32[8,16], index: 0, kind: input, shape index: {}]   ;;  %s1159_s1 = inlined_call_operand.hbm [shape: f32[8,8], index: 1, kind: input, shape index: {}]   ;;  %s1160_s2 = inlined_call_operand.hbm [shape: bf16[16,256], index: 2, kind: input, shape index: {}]   ;;  %s1161_s3 = inlined_call_operand.hbm [shape: bf16[8,256], index: 3, kind: input, shape index: {}]   ;;  %s1162_s4 = inlined_call_operand.vmem [shape: f32[1,256], index: 4, kind: input, shape index: {}]   ;;  %s1163_s5 = inlined_call_operand.hbm [shape: bf16[256,256], index: 5, kind: input, shape index: {}]   ;;  %s1164_s6 = inlined_call_operand.vmem [shape: f32[1,256], index: 6, kind: input, shape index: {}]   ;;  %s1165_s7 = inlined_call_operand.hbm [shape: bf16[256,128], index: 7, kind: input, shape index: {}]   ;;  %s1166_s8 = inlined_call_operand.<no memory space> [shape: f32[1,1], index: 8, kind: input, shape index: {}]   ;;  %s1167_s9 = inlined_call_operand.vmem [shape: f32[8,1], index: 9, kind: output, shape index: {}]  }
   0x1   :  { %v14_v0 = vstv %s1166_s8 }
   0x2   :  { %15 = vst [vmem:[#allocation2] sm:$0x1] %v14_v0 }
   0x3   :  { %16 = vsyncpa [#allocation4], 0 }
   0x4   :  { %17 = vsyncpa [#allocation6], 0 }
   0x5   :  { %18 = vsyncpa [#allocation9], 0  ;;  %s36_s13 = sshll.u32 %s1159_s1, 4  ;;  %s37_s13 = int_to_ptr.hbm [resolvable:$true] %s36_s13 }
   0x6   :  { %19 = vsyncpa [#allocation12], 0  ;;  %s1064_s14 = smov [#allocation5]   ;;  %s60_s18 = sshll.u32 %s1161_s3, 4  ;;  %s61_s18 = int_to_ptr.hbm [resolvable:$true] %s60_s18 }
   0x7   :  { %s38_s15 = sshll.u32 %s1064_s14, 4  ;;  %s1065_s8 = smov [#allocation8]   ;;  %s39_s15 = int_to_ptr.vmem [resolvable:$true] %s38_s15 }
   0x8   :  { %41 = dma.hbm_to_vmem [thread:$0]  %s37_s13, 128, %s39_s15, [#allocation6]  }
   0x9   :  { %s62_s19 = sshll.u32 %s1065_s8, 4  ;;  %s25_s22 = sshll.u32 %s1158_s0, 4  ;;  %s63_s19 = int_to_ptr.vmem [resolvable:$true] %s62_s19  ;;  %s26_s22 = int_to_ptr.hbm [resolvable:$true] %s25_s22 }
   0xa   :  { %65 = dma.hbm_to_vmem [thread:$0]  %s61_s18, 128, %s63_s19, [#allocation9]  }
   0xb   :  { %s46_s24 = sshll.u32 %s1160_s2, 4  ;;  %s1066_s25 = smov [#allocation3]   ;;  %s47_s24 = int_to_ptr.hbm [resolvable:$true] %s46_s24 }
   0xc   :  { %s27_s26 = sshll.u32 %s1066_s25, 4  ;;  %s1067_s3 = smov [#allocation7]   ;;  %s28_s26 = int_to_ptr.vmem [resolvable:$true] %s27_s26 }
   0xd   :  { %30 = dma.hbm_to_vmem [thread:$0]  %s26_s22, 128, %s28_s26, [#allocation4]  }
   0xe   :  { %s48_s27 = sshll.u32 %s1067_s3, 4  ;;  %s1068_s28 = smov 128   ;;  %s49_s27 = int_to_ptr.vmem [resolvable:$true] %s48_s27 }
   0xf   :  { %s1069_s29 = smov 8   ;;  %s72_s10 = sshll.u32 %s1163_s5, 4  ;;  %s73_s10 = int_to_ptr.hbm [resolvable:$true] %s72_s10 }
  0x10   :  { %54 = dma.hbm_to_vmem [thread:$0]  %s47_s24, 256, %s49_s27, [#allocation6], %s1068_s28, %s1068_s28, %s1069_s29  }
  0x11   :  { %s1070_s11 = smov [#allocation10]   ;;  %s87_s14 = sshll.u32 %s1165_s7, 4  ;;  %s88_s14 = int_to_ptr.hbm [resolvable:$true] %s87_s14 }
  0x12   :  { %s74_s12 = sshll.u32 %s1070_s11, 4  ;;  %s1071_s15 = smov [#allocation11]   ;;  %s75_s12 = int_to_ptr.vmem [resolvable:$true] %s74_s12 }
  0x13   :  { %80 = dma.hbm_to_vmem [thread:$0]  %s73_s10, 4096, %s75_s12, [#allocation9], %s1068_s28, %s1068_s28, %s1069_s29  }
  0x14   :  { %s89_s16 = sshll.u32 %s1071_s15, 4  ;;  %s1072_s17 = smov 64   ;;  %s90_s16 = int_to_ptr.vmem [resolvable:$true] %s89_s16 }
  0x15   :  { %s1073_s18 = smov 4  }
  0x16   :  { %95 = dma.hbm_to_vmem [thread:$0]  %s88_s14, 2048, %s90_s16, [#allocation12], %s1072_s17, %s1072_s17, %s1073_s18  }
  0x17   :  { %1056 = dma.done.wait [#allocation4], 128  }
  0x18   :  { %1057 = vsyncadd [#allocation4], 4294967168 }
  0x19   :  { %1058 = dma.done.wait [#allocation6], 384  }
  0x1a   :  { %1059 = vsyncadd [#allocation6], 4294966912 }
  0x1b   :  { %1060 = dma.done.wait [#allocation9], 4224  }
  0x1c   :  { %1061 = vsyncadd [#allocation9], 4294963072 }
  0x1d   :  { %1062 = dma.done.wait [#allocation12], 2048  }
  0x1e   :  { %1063 = vsyncadd [#allocation12], 4294965248  ;;  %v129_v1 = vld [vmem:[#allocation8] sm:$0xff]  ;;  %vm139_vm0 = vcmask 1043456   ;;  %v651_v2 = vld [vmem:[#allocation7] sm:$0xf] }
  0x1f   :  { %v131_v3 = vunpack.c.l.b16 %v129_v1  ;;  %v132_v4 = vunpack.c.h.b16 %v129_v1  ;;  %v852_v5 = vld [vmem:[#allocation7 + $0x4] sm:$0xf0]  ;;  %v851_v6 = vld [vmem:[#allocation7 + $0x4] sm:$0xf]  ;;  %v653_v7 = vld [vmem:[#allocation7 + $0x8] sm:$0xf0] }
  0x20   :  { %v125_v8 = vld [vmem:[#allocation5] sm:$0xff]  ;;  %vm135_vm1 = vcmask 64512   ;;  %v652_v9 = vor.u32 %v852_v5, %v651_v2  ;;  %v717_v10 = vld [vmem:[#allocation10 + $0x70] sm:$0xf]  ;;  %v868_v11 = vld [vmem:[#allocation10 + $0x74] sm:$0xf0]  ;;  %v656_v14 = vor.u32 %v851_v6, %v653_v7 }
  0x21   :  { %v133_v12 = vpack.c.b16 %v131_v3, %v131_v3  ;;  %v134_v13 = vpack.c.b16 %v132_v4, %v132_v4  ;;  %v718_v15 = vor.u32 %v868_v11, %v717_v10  ;;  %v781_v16 = vld [vmem:[#allocation10 + $0xf0] sm:$0xf]  ;;  %v884_v17 = vld [vmem:[#allocation10 + $0xf4] sm:$0xf0]  ;;  %v867_v18 = vld [vmem:[#allocation10 + $0x74] sm:$0xf]  ;;  %v126_v25 = vpack.c.bf16 %v125_v8, %v125_v8 }
  0x22   :  { %v782_v19 = vor.u32 %v884_v17, %v781_v16  ;;  %v719_v20 = vld [vmem:[#allocation10 + $0x78] sm:$0xf0]  ;;  %v883_v21 = vld [vmem:[#allocation10 + $0xf4] sm:$0xf]  ;;  %v709_v26 = vld [vmem:[#allocation10 + $0x60] sm:$0xf] }
  0x23   :  { %v783_v22 = vld [vmem:[#allocation10 + $0xf8] sm:$0xf0]  ;;  %v141_v23 = vsel %vm139_vm0, %v133_v12, 0  ;;  %v144_v24 = vsel %vm139_vm0, %v134_v13, 0  ;;  %422 = vmatpush.bf16.msra.mxu0 %v718_v15  ;;  %v866_v27 = vld [vmem:[#allocation10 + $0x64] sm:$0xf0]  ;;  %v722_v28 = vor.u32 %v867_v18, %v719_v20 }
  0x24   :  { %153 = vmatpush.bf16.msra.mxu2 %v141_v23  ;;  %166 = vmatpush.bf16.msra.mxu3 %v144_v24  ;;  %v786_v29 = vor.u32 %v883_v21, %v783_v22  ;;  %v773_v30 = vld [vmem:[#allocation10 + $0xe0] sm:$0xf]  ;;  %v882_v31 = vld [vmem:[#allocation10 + $0xe4] sm:$0xf0]  ;;  %v865_v32 = vld [vmem:[#allocation10 + $0x64] sm:$0xf]  ;;  %v710_v33 = vor.u32 %v866_v27, %v709_v26 }
  0x25   :  { %v711_v34 = vld [vmem:[#allocation10 + $0x68] sm:$0xf0]  ;;  %v881_v35 = vld [vmem:[#allocation10 + $0xe4] sm:$0xf]  ;;  %435 = vmatpush.bf16.msra.mxu1 %v782_v19  ;;  %v774_v37 = vor.u32 %v882_v31, %v773_v30  ;;  %v123_v40 = vld [vmem:[#allocation3] sm:$0xff]  ;;  %vm182_vm2 = vcmask 130048  }
  0x26   :  { %v775_v36 = vld [vmem:[#allocation10 + $0xe8] sm:$0xf0]  ;;  %v714_v38 = vor.u32 %v865_v32, %v711_v34  ;;  %v124_v41 = vpack.c.bf16 %v123_v40, %v123_v40  ;;  %v701_v42 = vld [vmem:[#allocation10 + $0x50] sm:$0xf]  ;;  %v864_v43 = vld [vmem:[#allocation10 + $0x54] sm:$0xf0] }
  0x27   :  { %647 = vmatmul.msk.bf16.vlgmr.msra.gmra.mxu2 %vm135_vm1, %v126_v25  ;;  %648 = vmatmul.msk.bf16.vlgmr.msra.gmra.mxu3 %vm135_vm1, %v126_v25  ;;  %v778_v39 = vor.u32 %v881_v35, %v775_v36  ;;  %v765_v44 = vld [vmem:[#allocation10 + $0xd0] sm:$0xf]  ;;  %v702_v45 = vor.u32 %v864_v43, %v701_v42  ;;  %v880_v46 = vld [vmem:[#allocation10 + $0xd4] sm:$0xf0]  ;;  %v863_v47 = vld [vmem:[#allocation10 + $0x54] sm:$0xf] }
  0x28   :  { %193 = vmatpush.bf16.msrb.mxu2 %v652_v9  ;;  %206 = vmatpush.bf16.msrb.mxu3 %v656_v14  ;;  %v703_v48 = vld [vmem:[#allocation10 + $0x58] sm:$0xf0]  ;;  %v766_v49 = vor.u32 %v880_v46, %v765_v44  ;;  %v879_v51 = vld [vmem:[#allocation10 + $0xd4] sm:$0xf]  ;;  %v693_v53 = vld [vmem:[#allocation10 + $0x40] sm:$0xf] }
  0x29   :  { %423 = vmatpush.bf16.msra.mxu0 %v710_v33  ;;  %436 = vmatpush.bf16.msra.mxu1 %v774_v37  ;;  %v706_v50 = vor.u32 %v863_v47, %v703_v48  ;;  %v767_v52 = vld [vmem:[#allocation10 + $0xd8] sm:$0xf0]  ;;  %v862_v55 = vld [vmem:[#allocation10 + $0x44] sm:$0xf0]  ;;  %v757_v56 = vld [vmem:[#allocation10 + $0xc0] sm:$0xf] }
  0x2a   :  { %v770_v54 = vor.u32 %v879_v51, %v767_v52  ;;  %v878_v57 = vld [vmem:[#allocation10 + $0xc4] sm:$0xf0]  ;;  %v694_v58 = vor.u32 %v862_v55, %v693_v53  ;;  %v861_v60 = vld [vmem:[#allocation10 + $0x44] sm:$0xf]  ;;  %v695_v61 = vld [vmem:[#allocation10 + $0x48] sm:$0xf0] }
  0x2b   :  { %v758_v59 = vor.u32 %v878_v57, %v757_v56  ;;  %v877_v62 = vld [vmem:[#allocation10 + $0xc4] sm:$0xf]  ;;  %v698_v63 = vor.u32 %v861_v60, %v695_v61  ;;  %v759_v0 = vld [vmem:[#allocation10 + $0xc8] sm:$0xf0]  ;;  %v685_v2 = vld [vmem:[#allocation10 + $0x30] sm:$0xf] }
  0x2c   :  { %448 = vmatpush.bf16.msra.mxu2 %v722_v28  ;;  %461 = vmatpush.bf16.msra.mxu3 %v786_v29  ;;  %v762_v1 = vor.u32 %v877_v62, %v759_v0  ;;  %v860_v3 = vld [vmem:[#allocation10 + $0x34] sm:$0xf0]  ;;  %v749_v4 = vld [vmem:[#allocation10 + $0xb0] sm:$0xf]  ;;  %v859_v7 = vld [vmem:[#allocation10 + $0x34] sm:$0xf] }
  0x2d   :  { %424 = vmatpush.bf16.msra.mxu0 %v702_v45  ;;  %437 = vmatpush.bf16.msra.mxu1 %v766_v49  ;;  %v686_v5 = vor.u32 %v860_v3, %v685_v2  ;;  %v876_v6 = vld [vmem:[#allocation10 + $0xb4] sm:$0xf0]  ;;  %v687_v8 = vld [vmem:[#allocation10 + $0x38] sm:$0xf0]  ;;  %v875_v11 = vld [vmem:[#allocation10 + $0xb4] sm:$0xf] }
  0x2e   :  { %v750_v9 = vor.u32 %v876_v6, %v749_v4  ;;  %v690_v10 = vor.u32 %v859_v7, %v687_v8  ;;  %v751_v12 = vld [vmem:[#allocation10 + $0xb8] sm:$0xf0]  ;;  %v677_v13 = vld [vmem:[#allocation10 + $0x20] sm:$0xf]  ;;  %v858_v15 = vld [vmem:[#allocation10 + $0x24] sm:$0xf0] }
  0x2f   :  { %v754_v14 = vor.u32 %v875_v11, %v751_v12  ;;  %v741_v16 = vld [vmem:[#allocation10 + $0xa0] sm:$0xf]  ;;  %v874_v17 = vld [vmem:[#allocation10 + $0xa4] sm:$0xf0]  ;;  %v678_v18 = vor.u32 %v858_v15, %v677_v13  ;;  %v857_v20 = vld [vmem:[#allocation10 + $0x24] sm:$0xf] }
  0x30   :  { %449 = vmatpush.bf16.msra.mxu2 %v714_v38  ;;  %462 = vmatpush.bf16.msra.mxu3 %v778_v39  ;;  %v742_v19 = vor.u32 %v874_v17, %v741_v16  ;;  %v679_v21 = vld [vmem:[#allocation10 + $0x28] sm:$0xf0]  ;;  %v873_v22 = vld [vmem:[#allocation10 + $0xa4] sm:$0xf]  ;;  %v669_v26 = vld [vmem:[#allocation10 + $0x10] sm:$0xf] }
  0x31   :  { %425 = vmatpush.bf16.msra.mxu0 %v694_v58  ;;  %438 = vmatpush.bf16.msra.mxu1 %v758_v59  ;;  %v682_v23 = vor.u32 %v857_v20, %v679_v21  ;;  %v743_v24 = vld [vmem:[#allocation10 + $0xa8] sm:$0xf0]  ;;  %v856_v27 = vld [vmem:[#allocation10 + $0x14] sm:$0xf0]  ;;  %v733_v28 = vld [vmem:[#allocation10 + $0x90] sm:$0xf] }
  0x32   :  { %v746_v25 = vor.u32 %v873_v22, %v743_v24  ;;  %v670_v29 = vor.u32 %v856_v27, %v669_v26  ;;  %v872_v30 = vld [vmem:[#allocation10 + $0x94] sm:$0xf0]  ;;  %v855_v31 = vld [vmem:[#allocation10 + $0x14] sm:$0xf]  ;;  %v671_v32 = vld [vmem:[#allocation10 + $0x18] sm:$0xf0] }
  0x33   :  { %v734_v33 = vor.u32 %v872_v30, %v733_v28  ;;  %v674_v34 = vor.u32 %v855_v31, %v671_v32  ;;  %v871_v35 = vld [vmem:[#allocation10 + $0x94] sm:$0xf]  ;;  %v735_v36 = vld [vmem:[#allocation10 + $0x98] sm:$0xf0]  ;;  %v661_v37 = vld [vmem:[#allocation10] sm:$0xf] }
  0x34   :  { %450 = vmatpush.bf16.msra.mxu2 %v706_v50  ;;  %463 = vmatpush.bf16.msra.mxu3 %v770_v54  ;;  %v738_v38 = vor.u32 %v871_v35, %v735_v36  ;;  %v854_v39 = vld [vmem:[#allocation10 + $0x4] sm:$0xf0]  ;;  %v725_v40 = vld [vmem:[#allocation10 + $0x80] sm:$0xf]  ;;  %v853_v44 = vld [vmem:[#allocation10 + $0x4] sm:$0xf] }
  0x35   :  { %426 = vmatpush.bf16.msra.mxu0 %v686_v5  ;;  %439 = vmatpush.bf16.msra.mxu1 %v750_v9  ;;  %v662_v42 = vor.u32 %v854_v39, %v661_v37  ;;  %v663_v45 = vld [vmem:[#allocation10 + $0x8] sm:$0xf0]  ;;  %v869_v46 = vld [vmem:[#allocation10 + $0x84] sm:$0xf]  ;;  %v892_v50 = vld [vmem:[#allocation11 + $0x38] sm:$0xff]  ;;  %vm637_vm3 = vcmask 7168  }
  0x36   :  { %v666_v47 = vor.u32 %v853_v44, %v663_v45  ;;  %v727_v48 = vld [vmem:[#allocation10 + $0x88] sm:$0xf0]  ;;  %v900_v51 = vld [vmem:[#allocation11 + $0x78] sm:$0xff]  ;;  %v891_v52 = vld [vmem:[#allocation11 + $0x30] sm:$0xff] }
  0x37   :  { %657 = vmatmul.msk.bf16.vlgmr.msrb.gmra.mxu2 %vm182_vm2, %v124_v41  ;;  %658 = vmatmul.msk.bf16.vlgmr.msrb.gmra.mxu3 %vm182_vm2, %v124_v41  ;;  %v870_v41 = vld [vmem:[#allocation10 + $0x84] sm:$0xf0]  ;;  %v730_v49 = vor.u32 %v869_v46, %v727_v48  ;;  %v899_v53 = vld [vmem:[#allocation11 + $0x70] sm:$0xff]  ;;  %v889_v58 = vld [vmem:[#allocation11 + $0x20] sm:$0xff] }
  0x38   :  { %451 = vmatpush.bf16.msra.mxu2 %v698_v63  ;;  %464 = vmatpush.bf16.msra.mxu3 %v762_v1  ;;  %v726_v43 = vor.u32 %v870_v41, %v725_v40  ;;  %v890_v56 = vld [vmem:[#allocation11 + $0x28] sm:$0xff]  ;;  %v897_v59 = vld [vmem:[#allocation11 + $0x60] sm:$0xff]  ;;  %v888_v62 = vld [vmem:[#allocation11 + $0x18] sm:$0xff] }
  0x39   :  { %427 = vmatpush.bf16.msra.mxu0 %v678_v18  ;;  %440 = vmatpush.bf16.msra.mxu1 %v742_v19  ;;  %v898_v57 = vld [vmem:[#allocation11 + $0x68] sm:$0xff]  ;;  %v212_v63 = vld [vmem:[%s1162_s4] sm:$0x3]  ;;  %v885_v18 = vld [vmem:[#allocation11] sm:$0xff] }
  0x3a   :  { %v887_v0 = vld [vmem:[#allocation11 + $0x10] sm:$0xff]  ;;  %v214_v1 = vperm.slane %v212_v63, 0  ;;  %v215_v2 = vperm.slane %v212_v63, 1  ;;  %v896_v15 = vld [vmem:[#allocation11 + $0x58] sm:$0xff]  ;;  %v886_v16 = vld [vmem:[#allocation11 + $0x8] sm:$0xff] }
  0x3b   :  { %v895_v17 = vld [vmem:[#allocation11 + $0x50] sm:$0xff]  ;;  %v894_v19 = vld [vmem:[#allocation11 + $0x48] sm:$0xff]  ;;  %v893_v20 = vld [vmem:[#allocation11 + $0x40] sm:$0xff] }
  0x3c   :  { %452 = vmatpush.bf16.msra.mxu2 %v690_v10  ;;  %465 = vmatpush.bf16.msra.mxu3 %v754_v14  ;;  %v256_v21 = vld [vmem:[%s1164_s6] sm:$0x3] }
  0x3d   :  { %428 = vmatpush.bf16.msra.mxu0 %v670_v29  ;;  %441 = vmatpush.bf16.msra.mxu1 %v734_v33  ;;  %v258_v22 = vperm.slane %v256_v21, 0  ;;  %v259_v27 = vperm.slane %v256_v21, 1  ;;  %v911_v41 = vld [vmem:[#allocation2] ss:$0 sm:$0xff] }
  0x40   :  { %453 = vmatpush.bf16.msra.mxu2 %v682_v23  ;;  %466 = vmatpush.bf16.msra.mxu3 %v746_v25 }
  0x41   :  { %429 = vmatpush.bf16.msra.mxu0 %v662_v42  ;;  %442 = vmatpush.bf16.msra.mxu1 %v726_v43 }
  0x44   :  { %454 = vmatpush.bf16.msra.mxu2 %v674_v34  ;;  %467 = vmatpush.bf16.msra.mxu3 %v738_v38 }
  0x45   :  { %606 = vmatpush.bf16.msrb.mxu0 %v892_v50  ;;  %619 = vmatpush.bf16.msrb.mxu1 %v900_v51 }
  0x48   :  { %455 = vmatpush.bf16.msra.mxu2 %v666_v47  ;;  %468 = vmatpush.bf16.msra.mxu3 %v730_v49 }
  0x49   :  { %607 = vmatpush.bf16.msrb.mxu0 %v891_v52  ;;  %620 = vmatpush.bf16.msrb.mxu1 %v899_v53 }
  0x4d   :  { %608 = vmatpush.bf16.msrb.mxu0 %v890_v56  ;;  %621 = vmatpush.bf16.msrb.mxu1 %v898_v57 }
  0x51   :  { %609 = vmatpush.bf16.msrb.mxu0 %v889_v58  ;;  %622 = vmatpush.bf16.msrb.mxu1 %v897_v59 }
  0x55   :  { %610 = vmatpush.bf16.msrb.mxu0 %v888_v62  ;;  %623 = vmatpush.bf16.msrb.mxu1 %v896_v15 }
  0x59   :  { %611 = vmatpush.bf16.msrb.mxu0 %v887_v0  ;;  %624 = vmatpush.bf16.msrb.mxu1 %v895_v17 }
  0x5d   :  { %612 = vmatpush.bf16.msrb.mxu0 %v886_v16  ;;  %625 = vmatpush.bf16.msrb.mxu1 %v894_v19 }
  0x61   :  { %613 = vmatpush.bf16.msrb.mxu0 %v885_v18  ;;  %626 = vmatpush.bf16.msrb.mxu1 %v893_v20 }
  0xaa   :  { %v155_v54 = vpop.f32.mrf.mxu2  ;;  %v168_v55 = vpop.f32.mrf.mxu3 }
  0xb2   :  { %v157_v60 = vpop.f32.mrf.mxu2  ;;  %v170_v61 = vpop.f32.mrf.mxu3 }
  0xba   :  { %v195_v3 = vpop.f32.mrf.mxu2  ;;  %v208_v4 = vpop.f32.mrf.mxu3 }
  0xbb   :  { %v196_v5 = vadd.f32 %v195_v3, %v155_v54  ;;  %v209_v6 = vadd.f32 %v208_v4, %v168_v55 }
  0xbd   :  { %v218_v7 = vadd.f32 %v214_v1, %v196_v5  ;;  %v219_v8 = vadd.f32 %v215_v2, %v209_v6 }
  0xbf   :  { %v220_v9 = vmax.f32 %v218_v7, 0.0  ;;  %v221_v10 = vmax.f32 %v219_v8, 0.0 }
  0xc1   :  { %v222_v11 = vpack.c.bf16 %v220_v9, %v220_v9  ;;  %v223_v12 = vpack.c.bf16 %v221_v10, %v221_v10 }
  0xc2   :  { %v197_v13 = vpop.f32.mrf.mxu2  ;;  %v210_v14 = vpop.f32.mrf.mxu3 }
  0xc3   :  { %430 = vmatmul.bf16.vlgmr.msra.gmra.mxu0 %v222_v11  ;;  %443 = vmatmul.bf16.vlgmr.msra.gmra.mxu1 %v223_v12 }
  0xc4   :  { %456 = vmatmul.bf16.vlgmr.msra.gmra.mxu2 %v222_v11  ;;  %469 = vmatmul.bf16.vlgmr.msra.gmra.mxu3 %v223_v12 }
 0x140   :  { %v431_v23 = vpop.f32.mrf.mxu0  ;;  %v444_v24 = vpop.f32.mrf.mxu1 }
 0x141   :  { %v432_v25 = vadd.f32 %v431_v23, %v258_v22 }
 0x143   :  { %v445_v26 = vadd.f32 %v444_v24, %v432_v25 }
 0x145   :  { %v474_v28 = vmax.f32 %v445_v26, 0.0 }
 0x147   :  { %v476_v29 = vpack.c.bf16 %v474_v28, %v474_v28  ;;  %v457_v30 = vpop.f32.mrf.mxu2  ;;  %v470_v31 = vpop.f32.mrf.mxu3 }
 0x148   :  { %v458_v32 = vadd.f32 %v457_v30, %v259_v27  ;;  %v433_v33 = vpop.f32.mrf.mxu0  ;;  %v446_v34 = vpop.f32.mrf.mxu1 }
 0x149   :  { %614 = vmatmul.bf16.vlgmr.msrb.gmra.mxu0 %v476_v29 }
 0x14a   :  { %v471_v35 = vadd.f32 %v470_v31, %v458_v32 }
 0x14c   :  { %v475_v36 = vmax.f32 %v471_v35, 0.0 }
 0x14e   :  { %v477_v37 = vpack.c.bf16 %v475_v36, %v475_v36 }
 0x14f   :  { %v459_v38 = vpop.f32.mrf.mxu2  ;;  %v472_v39 = vpop.f32.mrf.mxu3 }
 0x150   :  { %627 = vmatmul.bf16.vlgmr.msrb.gmra.mxu1 %v477_v37 }
 0x1c6   :  { %v615_v40 = vpop.f32.mrf.mxu0 }
 0x1cd   :  { %v628_v42 = vpop.f32.mrf.mxu1 }
 0x1ce   :  { %v629_v43 = vadd.f32 %v628_v42, %v615_v40  ;;  %v617_v44 = vpop.f32.mrf.mxu0 }
 0x1d0   :  { %v636_v45 = vadd.f32 %v911_v41, %v629_v43 }
 0x1d2   :  { %638 = vst.msk [vmem:[%s1167_s9] sm:$0xff] %vm637_vm3, %v636_v45 }
 0x1d5   :  { %v630_v46 = vpop.f32.mrf.mxu1 }
 0x1d6   :  { %643 = vsyncpa [#allocation4], 1 }
 0x1d7   :  { %644 = vsyncpa [#allocation6], 1 }
 0x1d8   :  { %645 = vsyncpa [#allocation9], 1 }
 0x1d9   :  { %646 = vsyncpa [#allocation12], 1 }

</bundles_post_ra>
